<compile_context>
chip_gen: v7x
topology: tpu7x:2x2x1
jax: 0.10.0
libtpu: 0.0.40
codegen_flags: <defaults>
</compile_context>

<pallas_src>
import functools
import math

import jax
import jax.numpy as jnp
from jax.experimental import pallas as pl
from jax.experimental.pallas import tpu as pltpu

EPS = 1e-5
_HI = jax.lax.Precision.HIGHEST


def _resnet_block_kernel(e_ref, o_ref, w1_ref, w2_ref, vec_ref, out_ref, *,
                         l_out, split_k):
    """One grid step: nb whole batch rows concatenated along the lane axis.

    e_ref / o_ref : (C, nb*l_out) f32   even / odd input columns of each row
    w1_ref/w2_ref : (C, 3C) bf16        fused conv weights, tap order [j-1, j, j+1]
    vec_ref       : (C, 4)  f32         packed per-channel [bn1_scale, bn1_bias, b1, b2]
    out_ref       : (C, nb*l_out)
    """
    c, nl = e_ref.shape
    lane = jax.lax.broadcasted_iota(jnp.int32, (1, nl), 1)
    pos = lane % l_out                      # position within each batch row
    first = pos == 0
    last = pos == l_out - 1

    e = e_ref[...]
    # MaxPool1d(k=3, stride=2) over ConstantPad1d((0,1), 0):
    #   out[i] = max(x[2i], x[2i+1], x[2i+2]); the "2i+2" tap is the next even column,
    #   which at the end of each row is the constant-0 right pad.
    e_next = jnp.where(last, 0.0, pltpu.roll(e, shift=nl - 1, axis=1))   # roll by -1
    shortcut = jnp.maximum(jnp.maximum(e, o_ref[...]), e_next)           # (C, NL) f32

    s1 = vec_ref[:, 0:1]
    t1 = vec_ref[:, 1:2]
    b1 = vec_ref[:, 2:3]
    b2 = vec_ref[:, 3:4]

    def conv3(h, w_ref, bias):
        # Conv1d(C, C, k=3, padding=1). Boundary masking stays in f32 (v5e has no bf16
        # VALU); each tap is cast to bf16 right at the MXU boundary.
        left = jnp.where(first, 0.0, pltpu.roll(h, shift=1, axis=1)).astype(jnp.bfloat16)
        mid = h.astype(jnp.bfloat16)
        right = jnp.where(last, 0.0, pltpu.roll(h, shift=nl - 1, axis=1)).astype(jnp.bfloat16)
        if split_k:
            # Large, 128-aligned C: no taps buffer at all -- three accumulating dots on
            # static (free) weight-ref slices; f32 accumulation throughout.
            y = jnp.dot(w_ref[:, 0:c], left, preferred_element_type=jnp.float32)
            y = y + jnp.dot(w_ref[:, c:2 * c], mid, preferred_element_type=jnp.float32)
            y = y + jnp.dot(w_ref[:, 2 * c:3 * c], right, preferred_element_type=jnp.float32)
        else:
            # Small C: one fused K=3C matmul keeps the MXU K-dim filled; taps built in bf16.
            taps = jnp.concatenate([left, mid, right], axis=0)
            y = jnp.dot(w_ref[...], taps, preferred_element_type=jnp.float32)
        return y + bias

    h = jnp.maximum(shortcut * s1 + t1, 0.0)   # BN1 (folded) + ReLU
    h = conv3(h, w1_ref, b1)                   # conv1 (BN2 folded into w1 / b1)
    h = jnp.maximum(h, 0.0)                    # ReLU
    h = conv3(h, w2_ref, b2)                   # conv2
    out_ref[...] = (h + shortcut).astype(out_ref.dtype)


def _round_up(a, b):
    return -(-a // b) * b


def _hw_info():
    """Best-effort chip query; safe fallbacks if unavailable."""
    vmem_bytes = 64 << 20          # conservative fallback (v7x-sized VMEM)
    multi_tc = False
    try:
        vmem_bytes = int(pltpu.get_tpu_info().vmem_capacity_bytes)
    except Exception:
        pass
    try:
        kind = jax.devices()[0].device_kind.lower()
        # Multi-TensorCore parts (megacore / dual-TC): v4, v5p, v7x.
        multi_tc = any(tag in kind for tag in ("v7", "7x", "v4", "v5p"))
    except Exception:
        pass
    return vmem_bytes, multi_tc


def _choose_tiling(n, c, l_out, *, target_lanes, vmem_bytes, multi_tc, weight_bufs):
    """Pick (padded batch rows, rows per grid step).

    Blocks always hold whole batch rows and are a multiple of 128 lanes (lane-dense
    stores); size is capped by target_lanes and by a per-chip VMEM budget. On
    multi-TensorCore chips an even step count is preferred; single-TC chips take the
    biggest block that fits (extra steps are pure serial overhead there).
    """
    row_quant = 128 // math.gcd(l_out, 128)       # rows so that rows*l_out % 128 == 0
    n_pad = _round_up(n, row_quant)

    # Rough VMEM bytes per lane column: double-buffered e/o/out f32 blocks (24*c)
    # + f32 temporaries shortcut/h/y (12*c) + bf16 taps / concat (~12*c) + slack.
    per_lane = 56 * c
    weight_bytes = 2 * (c * 3 * c * 2) * weight_bufs + 64 * c
    budget = int(0.5 * vmem_bytes) - weight_bytes
    max_blk = max(128, budget // per_lane)
    max_blk = min(max_blk, max(128, target_lanes))

    cands = [nb for nb in range(row_quant, n_pad + 1, row_quant) if n_pad % nb == 0]
    fit = [nb for nb in cands if nb * l_out <= max_blk] or [cands[0]]
    nb = max(fit)
    if multi_tc:
        even = [d for d in fit if (n_pad // d) % 2 == 0]
        if even:
            nb = max(even)                         # even split across the 2 TensorCores
    return n_pad, nb


def resnet_block_pallas(x, p, *, target_lanes=2048):
    n, c, l = x.shape
    if l % 2 != 0:
        raise NotImplementedError("resnet_block_pallas requires an even length L")
    l_out = (l + 1 - 3) // 2 + 1              # == l // 2
    f32 = jnp.float32

    # ---- fold BatchNorms (eval mode) into per-channel affine -------------------
    def bn_fold(g, b, m, v):
        s = g / jnp.sqrt(v + EPS)
        return s, b - m * s

    s1, t1 = bn_fold(p['bn1_g'], p['bn1_b'], p['bn1_m'], p['bn1_v'])
    s2, t2 = bn_fold(p['bn2_g'], p['bn2_b'], p['bn2_m'], p['bn2_v'])

    # BN2 folded into conv1:  s2*(W1*h + b1) + t2 == (s2 (.) W1)*h + (s2*b1 + t2)
    w1 = p['w1'] * s2[:, None, None]
    b1 = p['b1'] * s2 + t2
    w2, b2 = p['w2'], p['b2']

    def fuse_w(w):   # (Cout, Cin, K=3) -> (Cout, 3*Cin), tap-major [j-1, j, j+1]
        return jnp.transpose(w, (0, 2, 1)).reshape(c, 3 * c).astype(jnp.bfloat16)

    w1f, w2f = fuse_w(w1), fuse_w(w2)
    vec = jnp.stack([s1, t1, b1, b2], axis=1).astype(f32)          # (C, 4)

    vmem_bytes, multi_tc = _hw_info()
    split_k = (c >= 128) and (c % 128 == 0)
    single_buffer_weights = c >= 256
    weight_bufs = 1 if single_buffer_weights else 2
    n_pad, nb = _choose_tiling(n, c, l_out, target_lanes=target_lanes,
                               vmem_bytes=vmem_bytes, multi_tc=multi_tc,
                               weight_bufs=weight_bufs)

    # ---- activation layout plumbing (no arithmetic) -----------------------------
    # (N, C, L) -> even / odd column slabs (C, n_pad*l_out), batch rows along lanes;
    # the batch axis is zero-padded so every block is a multiple of 128 lanes.
    # TODO(synk): with channel-major (C, N, L) activations upstream (and a channel-major
    #             consumer) these transpose / strided-slice / transpose-back passes --
    #             extra HBM traffic in the mem-bound regime -- would disappear entirely.
    xt = jnp.transpose(x, (1, 0, 2)).astype(f32)                   # (C, N, L)
    even = xt[:, :, 0::2]                                          # (C, N, l_out)
    odd = xt[:, :, 1::2]
    if n_pad != n:
        pad = ((0, 0), (0, n_pad - n), (0, 0))
        even = jnp.pad(even, pad)
        odd = jnp.pad(odd, pad)
    e = even.reshape(c, n_pad * l_out)
    o = odd.reshape(c, n_pad * l_out)

    blk = nb * l_out
    grid = (n_pad // nb,)

    kernel = functools.partial(_resnet_block_kernel, l_out=l_out, split_k=split_k)

    def const_spec(shape):
        idx = lambda i: tuple(0 for _ in shape)
        if single_buffer_weights:
            try:   # grid-constant blocks: single-buffer to save VMEM headroom (v7x)
                return pl.BlockSpec(shape, idx, pipeline_mode=pl.Buffered(1))
            except Exception:
                pass
        return pl.BlockSpec(shape, idx)

    cost = pl.CostEstimate(
        flops=2 * 2 * c * (3 * c) * (n_pad * l_out),               # two fused conv matmuls
        transcendentals=0,
        bytes_accessed=3 * c * n_pad * l_out * 4 + 2 * c * 3 * c * 2 + c * 4 * 4,
    )

    out2d = pl.pallas_call(
        kernel,
        out_shape=jax.ShapeDtypeStruct((c, n_pad * l_out), x.dtype),
        grid_spec=pltpu.PrefetchScalarGridSpec(
            num_scalar_prefetch=0,
            grid=grid,
            in_specs=[
                pl.BlockSpec((c, blk), lambda i: (0, i)),          # even input columns
                pl.BlockSpec((c, blk), lambda i: (0, i)),          # odd input columns
                const_spec((c, 3 * c)),                            # fused conv1 weight (bf16)
                const_spec((c, 3 * c)),                            # fused conv2 weight (bf16)
                const_spec((c, 4)),                                # packed per-channel vector
            ],
            out_specs=pl.BlockSpec((c, blk), lambda i: (0, i)),
        ),
        compiler_params=pltpu.CompilerParams(
            dimension_semantics=("parallel",),
            vmem_limit_bytes=int(0.8 * vmem_bytes),
        ),
        cost_estimate=cost,
    )(e, o, w1f, w2f, vec)

    # drop the padded batch rows and go back to the module's (N, C, l_out) layout
    out = out2d.reshape(c, n_pad, l_out)[:, :n, :]
    return jnp.transpose(out, (1, 0, 2))


def init_params(key, C):
    ks = jax.random.split(key, 12)

    def nrm(k, shape, scale=0.1):
        return scale * jax.random.normal(k, shape, dtype=jnp.float32)

    return dict(
        w1=nrm(ks[0], (C, C, 3)), b1=nrm(ks[1], (C,)),
        w2=nrm(ks[2], (C, C, 3)), b2=nrm(ks[3], (C,)),
        bn1_g=1.0 + nrm(ks[4], (C,)), bn1_b=nrm(ks[5], (C,)),
        bn1_m=nrm(ks[6], (C,)), bn1_v=jnp.abs(nrm(ks[7], (C,))) + 1.0,
        bn2_g=1.0 + nrm(ks[8], (C,)), bn2_b=nrm(ks[9], (C,)),
        bn2_m=nrm(ks[10], (C,)), bn2_v=jnp.abs(nrm(ks[11], (C,))) + 1.0,
    )


def resnet_block_reference(x, p):
    """Pure-JAX reference mirroring the PyTorch forward (eval-mode BN), f32/HIGHEST."""
    xp = jnp.pad(x, ((0, 0), (0, 0), (0, 1)))                      # ConstantPad1d((0,1), 0)
    sc = jax.lax.reduce_window(xp, -jnp.inf, jax.lax.max,
                               (1, 1, 3), (1, 1, 2), 'VALID')      # MaxPool1d(3, stride=2)

    def bn(h, g, b, m, v):
        s = (g / jnp.sqrt(v + EPS))[None, :, None]
        return (h - m[None, :, None]) * s + b[None, :, None]

    def conv(h, w, b):
        y = jax.lax.conv_general_dilated(
            h, w, window_strides=(1,), padding=[(1, 1)],
            dimension_numbers=('NCH', 'OIH', 'NCH'), precision=_HI)
        return y + b[None, :, None]

    h = jax.nn.relu(bn(sc, p['bn1_g'], p['bn1_b'], p['bn1_m'], p['bn1_v']))
    h = conv(h, p['w1'], p['b1'])
    h = jax.nn.relu(bn(h, p['bn2_g'], p['bn2_b'], p['bn2_m'], p['bn2_v']))
    h = conv(h, p['w2'], p['b2'])
    return h + sc


if __name__ == "__main__":
    key = jax.random.PRNGKey(0)
    kx, kp = jax.random.split(key)

    N, C, L = 2, 4, 16
    x = jax.random.normal(kx, (N, C, L), dtype=jnp.float32)
    params = init_params(kp, C)

    out = jax.block_until_ready(jax.jit(resnet_block_pallas)(x, params))
    ref = jax.block_until_ready(resnet_block_reference(x, params))

    Lout = (L + 1 - 3) // 2 + 1
    assert out.shape == (N, C, Lout), out.shape
    max_err = float(jnp.max(jnp.abs(out - ref)))
    # bf16 MXU inputs with f32 accumulation; shortcut / residual path stays exact f32.
    assert jnp.allclose(out, ref, atol=2e-2, rtol=2e-2), f"max abs err {max_err}"

    print("KERNEL_OK")
</pallas_src>

<mosaic_0001>
module attributes {stable_mosaic.version = 11 : i64} {
  func.func @_resnet_block_kernel(%arg0: i32, %arg1: memref<4x128xf32, #tpu.memory_space<vmem>>, %arg2: memref<4x128xf32, #tpu.memory_space<vmem>>, %arg3: memref<4x12xbf16, #tpu.memory_space<vmem>>, %arg4: memref<4x12xbf16, #tpu.memory_space<vmem>>, %arg5: memref<4x4xf32, #tpu.memory_space<vmem>>, %arg6: memref<4x128xf32, #tpu.memory_space<vmem>>) attributes {dimension_semantics = [#tpu.dimension_semantics<parallel>], iteration_bounds = array<i64: 1>, scalar_prefetch = 0 : i64, scratch_operands = 0 : i64, tpu.core_type = #tpu.core_type<tc>, window_params = [{transform_indices = @transform_0, window_bounds = array<i64: 4, 128>}, {transform_indices = @transform_1, window_bounds = array<i64: 4, 128>}, {pipeline_mode = #tpu.pipeline_mode<synchronous>, transform_indices = @transform_2, window_bounds = array<i64: 4, 12>}, {pipeline_mode = #tpu.pipeline_mode<synchronous>, transform_indices = @transform_3, window_bounds = array<i64: 4, 12>}, {pipeline_mode = #tpu.pipeline_mode<synchronous>, transform_indices = @transform_4, window_bounds = array<i64: 4, 4>}, {transform_indices = @transform_5, window_bounds = array<i64: 4, 128>}]} {
    %0 = tpu.iota {dimensions = array<i32: 1>} : vector<1x128xi32>
    %c8_i32 = arith.constant 8 : i32
    %c0_i32 = arith.constant 0 : i32
    %1 = arith.cmpi eq, %c8_i32, %c0_i32 : i32
    %c1_i32 = arith.constant 1 : i32
    %2 = arith.select %1, %c1_i32, %c8_i32 : i32
    %3 = vector.broadcast %2 : i32 to vector<1x128xi32>
    %4 = arith.remsi %0, %3 : vector<1x128xi32>
    %c0_i32_0 = arith.constant 0 : i32
    %5 = vector.broadcast %c0_i32_0 : i32 to vector<1x128xi32>
    %6 = arith.cmpi ne, %4, %5 : vector<1x128xi32>
    %c0_i32_1 = arith.constant 0 : i32
    %7 = vector.broadcast %c0_i32_1 : i32 to vector<1x128xi32>
    %8 = arith.cmpi slt, %4, %7 : vector<1x128xi32>
    %c0_i32_2 = arith.constant 0 : i32
    %9 = arith.cmpi slt, %2, %c0_i32_2 : i32
    %10 = vector.broadcast %9 : i1 to vector<1x128xi1>
    %11 = vector.broadcast %10 : vector<1x128xi1> to vector<1x128xi1>
    %12 = arith.xori %8, %11 : vector<1x128xi1>
    %13 = arith.andi %12, %6 : vector<1x128xi1>
    %14 = vector.broadcast %2 : i32 to vector<1x128xi32>
    %15 = arith.addi %4, %14 : vector<1x128xi32>
    %16 = arith.select %13, %15, %4 : vector<1x128xi1>, vector<1x128xi32>
    %c0_i32_3 = arith.constant 0 : i32
    %17 = vector.broadcast %c0_i32_3 : i32 to vector<1x128xi32>
    %18 = arith.cmpi eq, %16, %17 : vector<1x128xi32>
    %c7_i32 = arith.constant 7 : i32
    %19 = vector.broadcast %c7_i32 : i32 to vector<1x128xi32>
    %20 = arith.cmpi eq, %16, %19 : vector<1x128xi32>
    %c0 = arith.constant 0 : index
    %c0_4 = arith.constant 0 : index
    %21 = vector.load %arg1[%c0, %c0_4] : memref<4x128xf32, #tpu.memory_space<vmem>>, vector<4x128xf32>
    %c127_i32 = arith.constant 127 : i32
    %22 = tpu.dynamic_rotate %21 by %c127_i32 dim 1 : vector<4x128xf32>, i32 -> vector<4x128xf32>
    %cst = arith.constant 0.000000e+00 : f32
    %23 = vector.shape_cast %20 : vector<1x128xi1> to vector<1x128xi1>
    %24 = vector.broadcast %23 : vector<1x128xi1> to vector<4x128xi1>
    %25 = vector.broadcast %cst : f32 to vector<4x128xf32>
    %26 = arith.select %24, %25, %22 : vector<4x128xi1>, vector<4x128xf32>
    %c0_5 = arith.constant 0 : index
    %c0_6 = arith.constant 0 : index
    %27 = vector.load %arg2[%c0_5, %c0_6] : memref<4x128xf32, #tpu.memory_space<vmem>>, vector<4x128xf32>
    %28 = arith.maximumf %21, %27 : vector<4x128xf32>
    %29 = arith.maximumf %28, %26 : vector<4x128xf32>
    %c0_7 = arith.constant 0 : index
    %c0_8 = arith.constant 0 : index
    %30 = vector.load %arg5[%c0_7, %c0_8] : memref<4x4xf32, #tpu.memory_space<vmem>>, vector<4x1xf32>
    %c0_9 = arith.constant 0 : index
    %c1 = arith.constant 1 : index
    %31 = vector.load %arg5[%c0_9, %c1] : memref<4x4xf32, #tpu.memory_space<vmem>>, vector<4x1xf32>
    %c0_10 = arith.constant 0 : index
    %c2 = arith.constant 2 : index
    %32 = vector.load %arg5[%c0_10, %c2] : memref<4x4xf32, #tpu.memory_space<vmem>>, vector<4x1xf32>
    %c0_11 = arith.constant 0 : index
    %c3 = arith.constant 3 : index
    %33 = vector.load %arg5[%c0_11, %c3] : memref<4x4xf32, #tpu.memory_space<vmem>>, vector<4x1xf32>
    %34 = vector.broadcast %30 : vector<4x1xf32> to vector<4x128xf32>
    %35 = arith.mulf %29, %34 : vector<4x128xf32>
    %36 = vector.broadcast %31 : vector<4x1xf32> to vector<4x128xf32>
    %37 = arith.addf %35, %36 : vector<4x128xf32>
    %cst_12 = arith.constant 0.000000e+00 : f32
    %38 = vector.broadcast %cst_12 : f32 to vector<4x128xf32>
    %39 = arith.maximumf %37, %38 : vector<4x128xf32>
    %c1_i32_13 = arith.constant 1 : i32
    %40 = tpu.dynamic_rotate %39 by %c1_i32_13 dim 1 : vector<4x128xf32>, i32 -> vector<4x128xf32>
    %cst_14 = arith.constant 0.000000e+00 : f32
    %41 = vector.shape_cast %18 : vector<1x128xi1> to vector<1x128xi1>
    %42 = vector.broadcast %41 : vector<1x128xi1> to vector<4x128xi1>
    %43 = vector.broadcast %cst_14 : f32 to vector<4x128xf32>
    %44 = arith.select %42, %43, %40 : vector<4x128xi1>, vector<4x128xf32>
    %45 = arith.truncf %44 : vector<4x128xf32> to vector<4x128xbf16>
    %46 = arith.truncf %39 : vector<4x128xf32> to vector<4x128xbf16>
    %c127_i32_15 = arith.constant 127 : i32
    %47 = tpu.dynamic_rotate %39 by %c127_i32_15 dim 1 : vector<4x128xf32>, i32 -> vector<4x128xf32>
    %cst_16 = arith.constant 0.000000e+00 : f32
    %48 = vector.shape_cast %20 : vector<1x128xi1> to vector<1x128xi1>
    %49 = vector.broadcast %48 : vector<1x128xi1> to vector<4x128xi1>
    %50 = vector.broadcast %cst_16 : f32 to vector<4x128xf32>
    %51 = arith.select %49, %50, %47 : vector<4x128xi1>, vector<4x128xf32>
    %52 = arith.truncf %51 : vector<4x128xf32> to vector<4x128xbf16>
    %53 = tpu.concatenate %45, %46, %52 in 0 : vector<4x128xbf16>, vector<4x128xbf16>, vector<4x128xbf16> -> vector<12x128xbf16>
    %c0_17 = arith.constant 0 : index
    %c0_18 = arith.constant 0 : index
    %54 = vector.load %arg3[%c0_17, %c0_18] : memref<4x12xbf16, #tpu.memory_space<vmem>>, vector<4x12xbf16>
    %cst_19 = arith.constant dense<0.000000e+00> : vector<4x128xf32>
    %55 = tpu.matmul %54, %53, %cst_19 {dimension_numbers = #tpu.dot_dimension_numbers<[1], [0], [0], [1], [0, 0, 1, 1], [], []>} : vector<4x12xbf16>, vector<12x128xbf16>, vector<4x128xf32> -> vector<4x128xf32>
    %56 = vector.broadcast %32 : vector<4x1xf32> to vector<4x128xf32>
    %57 = arith.addf %55, %56 : vector<4x128xf32>
    %cst_20 = arith.constant 0.000000e+00 : f32
    %58 = vector.broadcast %cst_20 : f32 to vector<4x128xf32>
    %59 = arith.maximumf %57, %58 : vector<4x128xf32>
    %c1_i32_21 = arith.constant 1 : i32
    %60 = tpu.dynamic_rotate %59 by %c1_i32_21 dim 1 : vector<4x128xf32>, i32 -> vector<4x128xf32>
    %cst_22 = arith.constant 0.000000e+00 : f32
    %61 = vector.shape_cast %18 : vector<1x128xi1> to vector<1x128xi1>
    %62 = vector.broadcast %61 : vector<1x128xi1> to vector<4x128xi1>
    %63 = vector.broadcast %cst_22 : f32 to vector<4x128xf32>
    %64 = arith.select %62, %63, %60 : vector<4x128xi1>, vector<4x128xf32>
    %65 = arith.truncf %64 : vector<4x128xf32> to vector<4x128xbf16>
    %66 = arith.truncf %59 : vector<4x128xf32> to vector<4x128xbf16>
    %c127_i32_23 = arith.constant 127 : i32
    %67 = tpu.dynamic_rotate %59 by %c127_i32_23 dim 1 : vector<4x128xf32>, i32 -> vector<4x128xf32>
    %cst_24 = arith.constant 0.000000e+00 : f32
    %68 = vector.shape_cast %20 : vector<1x128xi1> to vector<1x128xi1>
    %69 = vector.broadcast %68 : vector<1x128xi1> to vector<4x128xi1>
    %70 = vector.broadcast %cst_24 : f32 to vector<4x128xf32>
    %71 = arith.select %69, %70, %67 : vector<4x128xi1>, vector<4x128xf32>
    %72 = arith.truncf %71 : vector<4x128xf32> to vector<4x128xbf16>
    %73 = tpu.concatenate %65, %66, %72 in 0 : vector<4x128xbf16>, vector<4x128xbf16>, vector<4x128xbf16> -> vector<12x128xbf16>
    %c0_25 = arith.constant 0 : index
    %c0_26 = arith.constant 0 : index
    %74 = vector.load %arg4[%c0_25, %c0_26] : memref<4x12xbf16, #tpu.memory_space<vmem>>, vector<4x12xbf16>
    %cst_27 = arith.constant dense<0.000000e+00> : vector<4x128xf32>
    %75 = tpu.matmul %74, %73, %cst_27 {dimension_numbers = #tpu.dot_dimension_numbers<[1], [0], [0], [1], [0, 0, 1, 1], [], []>} : vector<4x12xbf16>, vector<12x128xbf16>, vector<4x128xf32> -> vector<4x128xf32>
    %76 = vector.broadcast %33 : vector<4x1xf32> to vector<4x128xf32>
    %77 = arith.addf %75, %76 : vector<4x128xf32>
    %78 = arith.addf %77, %29 : vector<4x128xf32>
    %c0_28 = arith.constant 0 : index
    %c0_29 = arith.constant 0 : index
    %79 = vector.load %arg6[%c0_28, %c0_29] : memref<4x128xf32, #tpu.memory_space<vmem>>, vector<4x128xf32>
    tpu.vector_store %arg6[%c0_28, %c0_29], %78 {strides = array<i32>} : memref<4x128xf32, #tpu.memory_space<vmem>>, vector<4x128xf32>,
    return
  }
  func.func @transform_0(%arg0: i32) -> (i32, i32) {
    %c0_i32 = arith.constant 0 : i32
    %c0_i32_0 = arith.constant 0 : i32
    return %c0_i32, %arg0 : i32, i32
  }
  func.func @transform_1(%arg0: i32) -> (i32, i32) {
    %c0_i32 = arith.constant 0 : i32
    %c0_i32_0 = arith.constant 0 : i32
    return %c0_i32, %arg0 : i32, i32
  }
  func.func @transform_2(%arg0: i32) -> (i32, i32) {
    %c0_i32 = arith.constant 0 : i32
    %c0_i32_0 = arith.constant 0 : i32
    %c0_i32_1 = arith.constant 0 : i32
    return %c0_i32, %c0_i32_0 : i32, i32
  }
  func.func @transform_3(%arg0: i32) -> (i32, i32) {
    %c0_i32 = arith.constant 0 : i32
    %c0_i32_0 = arith.constant 0 : i32
    %c0_i32_1 = arith.constant 0 : i32
    return %c0_i32, %c0_i32_0 : i32, i32
  }
  func.func @transform_4(%arg0: i32) -> (i32, i32) {
    %c0_i32 = arith.constant 0 : i32
    %c0_i32_0 = arith.constant 0 : i32
    %c0_i32_1 = arith.constant 0 : i32
    return %c0_i32, %c0_i32_0 : i32, i32
  }
  func.func @transform_5(%arg0: i32) -> (i32, i32) {
    %c0_i32 = arith.constant 0 : i32
    %c0_i32_0 = arith.constant 0 : i32
    return %c0_i32, %arg0 : i32, i32
  }
}

</mosaic_0001>

<bundles_post_ra>
// kernel: resnet_block_pallas.1
= control target key start
LH: loop header
LB: loop body
LE: loop exit
PB: predicated region body
PF: predicated region fallthrough
CT: control target
= control target key end

     0   :  { %v238_v0 = vmov 0   ;;  %s239_s22 = smov 127   ;;  %v240_v3 = vmov 1   ;;  %v21_v4 = vlaneseq  ;;  %v241_v14 = vmov 0.0   ;;  %s335_s4 = inlined_call_operand.vmem [shape: f32[4,4], index: 4, kind: input, shape index: {}]   ;;  %s336_s0 = inlined_call_operand.vmem [shape: f32[4,128], index: 0, kind: input, shape index: {}]   ;;  %s337_s1 = inlined_call_operand.vmem [shape: f32[4,128], index: 1, kind: input, shape index: {}]   ;;  %s338_s2 = inlined_call_operand.vmem [shape: bf16[4,12], index: 2, kind: input, shape index: {}]   ;;  %s339_s3 = inlined_call_operand.vmem [shape: bf16[4,12], index: 3, kind: input, shape index: {}]   ;;  %s340_s5 = inlined_call_operand.vmem [shape: f32[4,128], index: 5, kind: output, shape index: {}]  }
   0x1   :  { %234 = vset.pattern.permute.xlu0 %v238_v0  ;;  %v279_v1 = vld [vmem:[%s335_s4] sm:$0xf]  ;;  %214 = vmatprep.subr.bf16.mxu0 %v241_v14  ;;  %vm242_vm1 = vmmov 0   ;;  %v243_v19 = vmov 2   ;;  %vm74_vm3 = vcmask 1041408   ;;  %vm78_vm4 = vcmask 1043456  }
   0x2   :  { %v37_v2 = vld [vmem:[%s336_s0] sm:$0xf]  ;;  %49 = vperm.xlu0 %234, %v279_v1   ;;  %v22_v5 = vand.u32 127, %v21_v4  ;;  %220 = vmatprep.subr.bf16.mxu1 %v241_v14  ;;  %s244_s0 = smov 1   ;;  %vm90_vm5 = vcmask 1045504   ;;  %vm86_vm6 = vcmask 97280  }
   0x3   :  { %38 = vrot.lane.b32.xlu1 %v37_v2, %s239_s22  ;;  %v43_v7 = vld [vmem:[%s337_s1] sm:$0xf]  ;;  %216 = vmatprep.mubr.msk.bf16.mxu0 %vm242_vm1, %v241_v14  ;;  %v245_v41 = vmov 3  }
   0x4   :  { %v27_v6 = vand.u32 7, %v22_v5  ;;  %v44_v10 = vmax.f32 %v37_v2, %v43_v7  ;;  %222 = vmatprep.mubr.msk.bf16.mxu1 %vm242_vm1, %v241_v14  ;;  %v81_v33 = vld [vmem:[%s338_s2] sm:$0x3] }
   0x5   :  { %v152_v54 = vld [vmem:[%s339_s3] sm:$0x3] }
   0x6   :  { %235 = vset.pattern.permute.xlu0 %v240_v3  ;;  %vm290_vm0 = vcmp.eq.s32.totalorder %v27_v6, 7  ;;  %vm304_vm2 = vcmp.eq.s32.totalorder %v27_v6, 0 }
   0x7   :  { %54 = vperm.xlu0 %235, %v279_v1  }
   0xb   :  { %236 = vset.pattern.permute.xlu0 %v243_v19 }
   0xc   :  { %83 = vperm.xlu0 %236, %v279_v1  }
  0x10   :  { %237 = vset.pattern.permute.xlu0 %v245_v41 }
  0x11   :  { %154 = vperm.xlu0 %237, %v279_v1  }
  0x75   :  { %v39_v9 = vpop.permute.xlu1 %38 }
  0x76   :  { %v42_v11 = vsel %vm290_vm0, 0.0, %v39_v9 }
  0x77   :  { %v296_v12 = vmax.f32 %v44_v10, %v42_v11 }
  0x81   :  { %v50_v13 = vpop.permute.xlu0 %49 }
  0x82   :  { %v52_v15 = vmul.f32 %v50_v13, %v296_v12 }
  0x86   :  { %v55_v16 = vpop.permute.xlu0 %54 }
  0x87   :  { %v57_v17 = vadd.f32 %v55_v16, %v52_v15 }
  0x89   :  { %v58_v18 = vmax.f32 %v57_v17, 0.0 }
  0x8b   :  { %66 = vrot.lane.b32.xlu1 %v58_v18, %s239_s22  ;;  %v65_v22 = vpack.c.bf16 %v58_v18, %v58_v18  ;;  %v84_v34 = vpop.permute.xlu0 %83 }
  0x8d   :  { %v71_v27 = vrot.slane %v65_v22, 6 }
  0x8f   :  { %59 = vrot.lane.b32.xlu1 %v58_v18, %s244_s0 }
  0x90   :  { %v155_v55 = vpop.permute.xlu0 %154 }
  0xfd   :  { %v67_v20 = vpop.permute.xlu1 %66 }
  0xfe   :  { %v68_v21 = vsel %vm290_vm0, 0.0, %v67_v20 }
  0xff   :  { %v69_v24 = vpack.c.bf16 %v68_v21, %v68_v21 }
 0x101   :  { %v60_v25 = vpop.permute.xlu1 %59  ;;  %v73_v29 = vrot.slane %v69_v24, 4 }
 0x102   :  { %v63_v26 = vsel %vm304_vm2, 0.0, %v60_v25 }
 0x103   :  { %v64_v28 = vpack.c.bf16 %v63_v26, %v63_v26 }
 0x105   :  { %v77_v30 = vsel %vm74_vm3, %v64_v28, %v71_v27 }
 0x106   :  { %v80_v31 = vsel %vm78_vm4, %v77_v30, %v73_v29 }
 0x107   :  { %v91_v32 = vsel %vm90_vm5, %v80_v31, 0 }
 0x108   :  { %215 = vmatpush3.bf16.msra.mxu0 %v91_v32 }
 0x10b   :  { %217 = vmatmul.mubr.msk.bf16.vlgmr.msra.gmra.mrb[0].mxu0 %vm86_vm6, %v81_v33 }
 0x1de   :  { %v127_v35 = vpop.f32.mrb[0].mxu0 }
 0x1df   :  { %v128_v36 = vadd.f32 %v127_v35, %v84_v34  ;;  %v218_v37 = vpop.f32.mrb[1].mxu0 }
 0x1e0   :  { %v130_v38 = vpop.f32.mrb[2].mxu0 }
 0x1e1   :  { %v133_v39 = vmax.f32 %v128_v36, 0.0  ;;  %v219_v40 = vpop.f32.mrb[3].mxu0 }
 0x1e3   :  { %139 = vrot.lane.b32.xlu1 %v133_v39, %s239_s22  ;;  %v138_v44 = vpack.c.bf16 %v133_v39, %v133_v39 }
 0x1e5   :  { %v144_v48 = vrot.slane %v138_v44, 6 }
 0x1e7   :  { %134 = vrot.lane.b32.xlu1 %v133_v39, %s244_s0 }
 0x255   :  { %v140_v42 = vpop.permute.xlu1 %139 }
 0x256   :  { %v141_v43 = vsel %vm290_vm0, 0.0, %v140_v42 }
 0x257   :  { %v142_v45 = vpack.c.bf16 %v141_v43, %v141_v43 }
 0x259   :  { %v135_v46 = vpop.permute.xlu1 %134  ;;  %v146_v50 = vrot.slane %v142_v45, 4 }
 0x25a   :  { %v136_v47 = vsel %vm304_vm2, 0.0, %v135_v46 }
 0x25b   :  { %v137_v49 = vpack.c.bf16 %v136_v47, %v136_v47 }
 0x25d   :  { %v149_v51 = vsel %vm74_vm3, %v137_v49, %v144_v48 }
 0x25e   :  { %v151_v52 = vsel %vm78_vm4, %v149_v51, %v146_v50 }
 0x25f   :  { %v160_v53 = vsel %vm90_vm5, %v151_v52, 0 }
 0x260   :  { %221 = vmatpush3.bf16.msra.mxu1 %v160_v53 }
 0x263   :  { %223 = vmatmul.mubr.msk.bf16.vlgmr.msra.gmra.mrb[0].mxu1 %vm86_vm6, %v152_v54 }
 0x336   :  { %v196_v56 = vpop.f32.mrb[0].mxu1 }
 0x337   :  { %v197_v57 = vadd.f32 %v196_v56, %v155_v55  ;;  %v224_v58 = vpop.f32.mrb[1].mxu1 }
 0x338   :  { %v199_v59 = vpop.f32.mrb[2].mxu1 }
 0x339   :  { %v202_v60 = vadd.f32 %v197_v57, %v296_v12  ;;  %v225_v61 = vpop.f32.mrb[3].mxu1 }
 0x33b   :  { %203 = vst [vmem:[%s340_s5] sm:$0xf] %v202_v60 }

</bundles_post_ra>
